<compile_context>
chip_gen: v7x
topology: tpu7x:2x2x1
jax: 0.10.0
libtpu: 0.0.40
codegen_flags: <defaults>
</compile_context>

<pallas_src>
import jax
import jax.numpy as jnp
from jax.experimental import pallas as pl
from jax.experimental.pallas import tpu as pltpu


def pers_kernel(x_ref, meta_ref, w1p_ref, w1m_ref, b1_ref, w2_ref, b2_ref, out_ref):
    # fc1 with the sequence mean folded into the pre-tiled / pre-scaled weights.
    # x_ref: (TB, S*3F) bf16, w1p_ref: (S*3F, nhid) bf16 -> f32 accumulate on the MXU.
    h = jnp.dot(x_ref[...], w1p_ref[...], preferred_element_type=jnp.float32)

    # Meta features (K=2) on the VPU: two broadcast multiply-adds, plus bias.
    meta = meta_ref[...]                                   # (TB, 2) f32
    h = (h
         + meta[:, 0:1] * w1m_ref[0:1, :]
         + meta[:, 1:2] * w1m_ref[1:2, :]
         + b1_ref[...])

    # TODO(synk): nn.Dropout is identity in eval mode; training-mode dropout not implemented.
    h = jnp.maximum(h, 0.0)                                # ReLU (f32, VPU)

    # fc2 (nout == 1): VPU multiply + lane reduction instead of an MXU pass.
    y = jnp.sum(h * w2_ref[...], axis=-1, keepdims=True) + b2_ref[...]

    # Sigmoid.
    out_ref[...] = 1.0 / (1.0 + jnp.exp(-y))


def pers_model(latent_emb_mod, meta_emb, params, *, tb_max=1024):
    """latent_emb_mod: list of nmod arrays (B, S, F); meta_emb: (B, 2)."""
    w1, b1, w2, b2 = params
    B, S, F = latent_emb_mod[0].shape
    nmod = len(latent_emb_mod)
    nfeat_cat = nmod * F                       # 96
    sk = S * nfeat_cat                         # 768  (K for fc1, multiple of 256)
    nhid = w1.shape[1]
    nout = w2.shape[1]

    # ---- wrapper-side layout plumbing (all trace-time / fused XLA ops) ----
    x_cat = jnp.concatenate(latent_emb_mod, axis=-1)        # (B, S, 3F)
    x_flat = x_cat.reshape(B, sk).astype(jnp.bfloat16)      # lane-dense (B, 768) bf16

    # Fold mean over S into fc1: W1'[s*3F + c, j] = W1[c, j] / S.
    w1_tiled = jnp.tile(w1[:nfeat_cat, :] / S, (S, 1)).astype(jnp.bfloat16)  # (768, nhid)
    w1_meta = w1[nfeat_cat:, :].astype(jnp.float32)          # (2, nhid), VPU path
    b1_f = b1.astype(jnp.float32)                            # (1, nhid)
    w2_row = w2.reshape(1, nhid).astype(jnp.float32)         # (1, nhid)
    b2_f = b2.reshape(1, nout).astype(jnp.float32)           # (1, 1)
    meta_f = meta_emb.astype(jnp.float32)                    # (B, 2)

    # ---- batch tiling ----
    tb = min(tb_max, B)
    tb = max(8, ((tb + 7) // 8) * 8)            # sublane-aligned batch tile
    grid = (pl.cdiv(B, tb),)

    cost = pl.CostEstimate(
        flops=2 * B * sk * nhid + 2 * B * 2 * nhid + 2 * B * nhid,
        transcendentals=B,
        bytes_accessed=(x_flat.size * 2 + meta_f.size * 4
                        + w1_tiled.size * 2
                        + (w1_meta.size + b1_f.size + w2_row.size + b2_f.size) * 4
                        + B * nout * 4),
    )

    return pl.pallas_call(
        pers_kernel,
        out_shape=jax.ShapeDtypeStruct((B, nout), jnp.float32),
        grid=grid,
        in_specs=[
            pl.BlockSpec((tb, sk), lambda i: (i, 0)),        # x      (batch-tiled)
            pl.BlockSpec((tb, 2), lambda i: (i, 0)),         # meta   (batch-tiled)
            pl.BlockSpec((sk, nhid), lambda i: (0, 0)),      # W1'    (resident)
            pl.BlockSpec((2, nhid), lambda i: (0, 0)),       # W1meta (resident)
            pl.BlockSpec((1, nhid), lambda i: (0, 0)),       # b1     (resident)
            pl.BlockSpec((1, nhid), lambda i: (0, 0)),       # w2 row (resident)
            pl.BlockSpec((1, nout), lambda i: (0, 0)),       # b2     (resident)
        ],
        out_specs=pl.BlockSpec((tb, nout), lambda i: (i, 0)),
        compiler_params=pltpu.CompilerParams(
            dimension_semantics=("parallel",),
            vmem_limit_bytes=32 * 1024 * 1024,
        ),
        cost_estimate=cost,
    )(x_flat, meta_f, w1_tiled, w1_meta, b1_f, w2_row, b2_f)


def init_params(key, nmod=3, nfeat=32):
    ninp = nmod * nfeat + 2
    nhid = 2 * ninp
    nout = 1
    k1, k2, k3, k4 = jax.random.split(key, 4)
    # Deterministic uniform init, similar in scale to nn.Linear's default.
    w1 = jax.random.uniform(k1, (ninp, nhid), jnp.float32,
                            minval=-1.0, maxval=1.0) / jnp.sqrt(ninp)
    b1 = jax.random.uniform(k2, (1, nhid), jnp.float32,
                            minval=-1.0, maxval=1.0) / jnp.sqrt(ninp)
    w2 = jax.random.uniform(k3, (nhid, nout), jnp.float32,
                            minval=-1.0, maxval=1.0) / jnp.sqrt(nhid)
    b2 = jax.random.uniform(k4, (1, nout), jnp.float32,
                            minval=-1.0, maxval=1.0) / jnp.sqrt(nhid)
    return w1, b1, w2, b2


def pers_model_ref(latent_emb_mod, meta_emb, params):
    """Pure-JAX f32 reference matching the PyTorch forward (eval mode)."""
    w1, b1, w2, b2 = params
    emb = jnp.concatenate([jnp.mean(e, axis=1) for e in latent_emb_mod], axis=1)
    x = jnp.concatenate([emb, meta_emb], axis=1)
    h = jnp.maximum(x @ w1 + b1, 0.0)
    y = h @ w2 + b2
    return jax.nn.sigmoid(y)


if __name__ == "__main__":
    nmod, nfeat = 3, 32
    B, S = 8, 8

    key = jax.random.PRNGKey(0)
    kp, k0, k1, k2, k3 = jax.random.split(key, 5)

    params = init_params(kp, nmod=nmod, nfeat=nfeat)
    latent_emb_mod = [
        jax.random.normal(k0, (B, S, nfeat), jnp.float32),
        jax.random.normal(k1, (B, S, nfeat), jnp.float32),
        jax.random.normal(k2, (B, S, nfeat), jnp.float32),
    ]
    meta_emb = jax.random.normal(k3, (B, 2), jnp.float32)

    out = jax.block_until_ready(pers_model(latent_emb_mod, meta_emb, params))
    ref = pers_model_ref(latent_emb_mod, meta_emb, params)

    assert out.shape == (B, 1)
    # bf16 matmul inputs (f32 accumulation) -> slightly looser tolerance vs f32 reference.
    assert jnp.allclose(out, ref, atol=5e-3, rtol=5e-3), (out, ref)

    print("KERNEL_OK")
</pallas_src>

<mosaic_0001>
module attributes {stable_mosaic.version = 11 : i64} {
  func.func @pers_kernel(%arg0: i32, %arg1: memref<8x768xbf16, #tpu.memory_space<vmem>>, %arg2: memref<8x2xf32, #tpu.memory_space<vmem>>, %arg3: memref<768x196xbf16, #tpu.memory_space<vmem>>, %arg4: memref<2x196xf32, #tpu.memory_space<vmem>>, %arg5: memref<1x196xf32, #tpu.memory_space<vmem>>, %arg6: memref<1x196xf32, #tpu.memory_space<vmem>>, %arg7: memref<1x1xf32, #tpu.memory_space<vmem>>, %arg8: memref<8x1xf32, #tpu.memory_space<vmem>>) attributes {dimension_semantics = [#tpu.dimension_semantics<parallel>], iteration_bounds = array<i64: 1>, scalar_prefetch = 0 : i64, scratch_operands = 0 : i64, tpu.core_type = #tpu.core_type<tc>, window_params = [{transform_indices = @transform_0, window_bounds = array<i64: 8, 768>}, {transform_indices = @transform_1, window_bounds = array<i64: 8, 2>}, {pipeline_mode = #tpu.pipeline_mode<synchronous>, transform_indices = @transform_2, window_bounds = array<i64: 768, 196>}, {pipeline_mode = #tpu.pipeline_mode<synchronous>, transform_indices = @transform_3, window_bounds = array<i64: 2, 196>}, {pipeline_mode = #tpu.pipeline_mode<synchronous>, transform_indices = @transform_4, window_bounds = array<i64: 1, 196>}, {pipeline_mode = #tpu.pipeline_mode<synchronous>, transform_indices = @transform_5, window_bounds = array<i64: 1, 196>}, {pipeline_mode = #tpu.pipeline_mode<synchronous>, transform_indices = @transform_6, window_bounds = array<i64: 1, 1>}, {transform_indices = @transform_7, window_bounds = array<i64: 8, 1>}]} {
    %c0 = arith.constant 0 : index
    %c0_0 = arith.constant 0 : index
    %0 = vector.load %arg1[%c0, %c0_0] : memref<8x768xbf16, #tpu.memory_space<vmem>>, vector<8x768xbf16>
    %c0_1 = arith.constant 0 : index
    %c0_2 = arith.constant 0 : index
    %1 = vector.load %arg3[%c0_1, %c0_2] : memref<768x196xbf16, #tpu.memory_space<vmem>>, vector<768x196xbf16>
    %cst = arith.constant dense<0.000000e+00> : vector<8x196xf32>
    %2 = tpu.matmul %0, %1, %cst {dimension_numbers = #tpu.dot_dimension_numbers<[1], [0], [0], [1], [0, 0, 1, 1], [], []>} : vector<8x768xbf16>, vector<768x196xbf16>, vector<8x196xf32> -> vector<8x196xf32>
    %c0_3 = arith.constant 0 : index
    %c0_4 = arith.constant 0 : index
    %3 = vector.load %arg2[%c0_3, %c0_4] : memref<8x2xf32, #tpu.memory_space<vmem>>, vector<8x2xf32>
    %4 = vector.extract_strided_slice %3 {offsets = [0, 0], sizes = [8, 1], strides = [1, 1]} : vector<8x2xf32> to vector<8x1xf32>
    %c0_5 = arith.constant 0 : index
    %c0_6 = arith.constant 0 : index
    %5 = vector.load %arg4[%c0_5, %c0_6] : memref<2x196xf32, #tpu.memory_space<vmem>>, vector<1x196xf32>
    %6 = vector.broadcast %4 : vector<8x1xf32> to vector<8x196xf32>
    %7 = vector.broadcast %5 : vector<1x196xf32> to vector<8x196xf32>
    %8 = arith.mulf %6, %7 : vector<8x196xf32>
    %9 = arith.addf %2, %8 : vector<8x196xf32>
    %10 = vector.extract_strided_slice %3 {offsets = [0, 1], sizes = [8, 1], strides = [1, 1]} : vector<8x2xf32> to vector<8x1xf32>
    %c1 = arith.constant 1 : index
    %c0_7 = arith.constant 0 : index
    %11 = vector.load %arg4[%c1, %c0_7] : memref<2x196xf32, #tpu.memory_space<vmem>>, vector<1x196xf32>
    %12 = vector.broadcast %10 : vector<8x1xf32> to vector<8x196xf32>
    %13 = vector.broadcast %11 : vector<1x196xf32> to vector<8x196xf32>
    %14 = arith.mulf %12, %13 : vector<8x196xf32>
    %15 = arith.addf %9, %14 : vector<8x196xf32>
    %c0_8 = arith.constant 0 : index
    %c0_9 = arith.constant 0 : index
    %16 = vector.load %arg5[%c0_8, %c0_9] : memref<1x196xf32, #tpu.memory_space<vmem>>, vector<1x196xf32>
    %17 = vector.broadcast %16 : vector<1x196xf32> to vector<8x196xf32>
    %18 = arith.addf %15, %17 : vector<8x196xf32>
    %cst_10 = arith.constant 0.000000e+00 : f32
    %19 = vector.broadcast %cst_10 : f32 to vector<8x196xf32>
    %20 = arith.maximumf %18, %19 : vector<8x196xf32>
    %c0_11 = arith.constant 0 : index
    %c0_12 = arith.constant 0 : index
    %21 = vector.load %arg6[%c0_11, %c0_12] : memref<1x196xf32, #tpu.memory_space<vmem>>, vector<1x196xf32>
    %22 = vector.broadcast %21 : vector<1x196xf32> to vector<8x196xf32>
    %23 = arith.mulf %20, %22 : vector<8x196xf32>
    %cst_13 = arith.constant dense<0.000000e+00> : vector<8xf32>
    %24 = vector.multi_reduction <add>, %23, %cst_13 [1] : vector<8x196xf32> to vector<8xf32>
    %25 = vector.shape_cast %24 : vector<8xf32> to vector<8x1xf32>
    %c0_14 = arith.constant 0 : index
    %c0_15 = arith.constant 0 : index
    %26 = vector.load %arg7[%c0_14, %c0_15] : memref<1x1xf32, #tpu.memory_space<vmem>>, vector<1x1xf32>
    %27 = vector.broadcast %26 : vector<1x1xf32> to vector<8x1xf32>
    %28 = arith.addf %25, %27 : vector<8x1xf32>
    %cst_16 = arith.constant 0.000000e+00 : f32
    %29 = vector.broadcast %cst_16 : f32 to vector<8x1xf32>
    %30 = arith.subf %29, %28 : vector<8x1xf32>
    %31 = math.exp %30 : vector<8x1xf32>
    %cst_17 = arith.constant 1.000000e+00 : f32
    %32 = vector.broadcast %cst_17 : f32 to vector<8x1xf32>
    %33 = arith.addf %32, %31 : vector<8x1xf32>
    %cst_18 = arith.constant 1.000000e+00 : f32
    %34 = vector.broadcast %cst_18 : f32 to vector<8x1xf32>
    %35 = arith.divf %34, %33 : vector<8x1xf32>
    %c0_19 = arith.constant 0 : index
    %c0_20 = arith.constant 0 : index
    %36 = vector.load %arg8[%c0_19, %c0_20] : memref<8x1xf32, #tpu.memory_space<vmem>>, vector<8x1xf32>
    tpu.vector_store %arg8[%c0_19, %c0_20], %35 {strides = array<i32>} : memref<8x1xf32, #tpu.memory_space<vmem>>, vector<8x1xf32>,
    return
  }
  func.func @transform_0(%arg0: i32) -> (i32, i32) {
    %c0_i32 = arith.constant 0 : i32
    %c0_i32_0 = arith.constant 0 : i32
    return %arg0, %c0_i32 : i32, i32
  }
  func.func @transform_1(%arg0: i32) -> (i32, i32) {
    %c0_i32 = arith.constant 0 : i32
    %c0_i32_0 = arith.constant 0 : i32
    return %arg0, %c0_i32 : i32, i32
  }
  func.func @transform_2(%arg0: i32) -> (i32, i32) {
    %c0_i32 = arith.constant 0 : i32
    %c0_i32_0 = arith.constant 0 : i32
    %c0_i32_1 = arith.constant 0 : i32
    return %c0_i32, %c0_i32_0 : i32, i32
  }
  func.func @transform_3(%arg0: i32) -> (i32, i32) {
    %c0_i32 = arith.constant 0 : i32
    %c0_i32_0 = arith.constant 0 : i32
    %c0_i32_1 = arith.constant 0 : i32
    return %c0_i32, %c0_i32_0 : i32, i32
  }
  func.func @transform_4(%arg0: i32) -> (i32, i32) {
    %c0_i32 = arith.constant 0 : i32
    %c0_i32_0 = arith.constant 0 : i32
    %c0_i32_1 = arith.constant 0 : i32
    return %c0_i32, %c0_i32_0 : i32, i32
  }
  func.func @transform_5(%arg0: i32) -> (i32, i32) {
    %c0_i32 = arith.constant 0 : i32
    %c0_i32_0 = arith.constant 0 : i32
    %c0_i32_1 = arith.constant 0 : i32
    return %c0_i32, %c0_i32_0 : i32, i32
  }
  func.func @transform_6(%arg0: i32) -> (i32, i32) {
    %c0_i32 = arith.constant 0 : i32
    %c0_i32_0 = arith.constant 0 : i32
    %c0_i32_1 = arith.constant 0 : i32
    return %c0_i32, %c0_i32_0 : i32, i32
  }
  func.func @transform_7(%arg0: i32) -> (i32, i32) {
    %c0_i32 = arith.constant 0 : i32
    %c0_i32_0 = arith.constant 0 : i32
    return %arg0, %c0_i32 : i32, i32
  }
}

</mosaic_0001>

<bundles_post_ra>
// kernel: tpu_custom_call.1
= control target key start
LH: loop header
LB: loop body
LE: loop exit
PB: predicated region body
PF: predicated region fallthrough
CT: control target
= control target key end

     0   :  { %v1109_v6 = vmov 0   ;;  %vm822_vm0 = vcmask 556032   ;;  %vm841_vm1 = vcmask 7168   ;;  %s1475_s2 = inlined_call_operand.vmem [shape: bf16[768,196], index: 2, kind: input, shape index: {}]   ;;  %s1476_s0 = inlined_call_operand.vmem [shape: bf16[8,768], index: 0, kind: input, shape index: {}]   ;;  %s1477_s1 = inlined_call_operand.vmem [shape: f32[8,2], index: 1, kind: input, shape index: {}]   ;;  %s1478_s6 = inlined_call_operand.<no memory space> [shape: f32[1,1], index: 6, kind: input, shape index: {}]   ;;  %s1479_s3 = inlined_call_operand.vmem [shape: f32[2,196], index: 3, kind: input, shape index: {}]   ;;  %s1480_s4 = inlined_call_operand.vmem [shape: f32[1,196], index: 4, kind: input, shape index: {}]   ;;  %s1481_s5 = inlined_call_operand.vmem [shape: f32[1,196], index: 5, kind: input, shape index: {}]   ;;  %s1482_s7 = inlined_call_operand.vmem [shape: f32[8,1], index: 7, kind: output, shape index: {}]  }
   0x1   :  { %v955_v0 = vld [vmem:[%s1475_s2 + $0x4] ss:$8 sps:$4 sm:$0xff]   ;;  %v957_v1 = vld [vmem:[%s1475_s2] ss:$8 sps:$4 sm:$0xff]   ;;  %v961_v4 = vld [vmem:[%s1475_s2 + $0x14] ss:$8 sps:$4 sm:$0xff]   ;;  %953 = vset.pattern.permute.xlu0 %v1109_v6 }
   0x2   :  { %648 = vmatprep.subr.bf16.mxu0 %v955_v0  ;;  %v958_v2 = vld [vmem:[%s1475_s2 + $0x104] ss:$8 sps:$4 sm:$0xff]   ;;  %v960_v3 = vld [vmem:[%s1475_s2 + $0x100] ss:$8 sps:$4 sm:$0xff]   ;;  %v963_v5 = vld [vmem:[%s1475_s2 + $0x10] ss:$8 sps:$4 sm:$0xff]  }
   0x3   :  { %649 = vmatpush1.bf16.msra.mxu0 %v957_v1  ;;  %689 = vmatprep.subr.bf16.mxu1 %v958_v2  ;;  %v964_v7 = vld [vmem:[%s1475_s2 + $0x114] ss:$8 sps:$4 sm:$0xff]   ;;  %v966_v8 = vld [vmem:[%s1475_s2 + $0x110] ss:$8 sps:$4 sm:$0xff]   ;;  %v967_v9 = vld [vmem:[%s1475_s2 + $0x24] ss:$8 sps:$4 sm:$0xff]  }
   0x4   :  { %690 = vmatpush1.bf16.msra.mxu1 %v960_v3  ;;  %650 = vmatprep.subr.bf16.mxu0 %v961_v4  ;;  %v969_v10 = vld [vmem:[%s1475_s2 + $0x20] ss:$8 sps:$4 sm:$0xff]   ;;  %v970_v11 = vld [vmem:[%s1475_s2 + $0x124] ss:$8 sps:$4 sm:$0xff]   ;;  %v973_v12 = vld [vmem:[%s1475_s2 + $0x34] ss:$8 sps:$4 sm:$0xff]  }
   0x5   :  { %691 = vmatprep.subr.bf16.mxu1 %v964_v7  ;;  %v972_v13 = vld [vmem:[%s1475_s2 + $0x120] ss:$8 sps:$4 sm:$0xff]   ;;  %v976_v14 = vld [vmem:[%s1475_s2 + $0x134] ss:$8 sps:$4 sm:$0xff]   ;;  %v975_v15 = vld [vmem:[%s1475_s2 + $0x30] ss:$8 sps:$4 sm:$0xff]  }
   0x6   :  { %v979_v16 = vld [vmem:[%s1475_s2 + $0x44] ss:$8 sps:$4 sm:$0xff]   ;;  %v978_v17 = vld [vmem:[%s1475_s2 + $0x130] ss:$8 sps:$4 sm:$0xff]   ;;  %v981_v19 = vld [vmem:[%s1475_s2 + $0x40] ss:$8 sps:$4 sm:$0xff]  }
   0x7   :  { %651 = vmatpush1.bf16.msra.mxu0 %v963_v5  ;;  %v982_v18 = vld [vmem:[%s1475_s2 + $0x144] ss:$8 sps:$4 sm:$0xff]   ;;  %v985_v20 = vld [vmem:[%s1475_s2 + $0x54] ss:$8 sps:$4 sm:$0xff]   ;;  %v984_v21 = vld [vmem:[%s1475_s2 + $0x140] ss:$8 sps:$4 sm:$0xff]  }
   0x8   :  { %652 = vmatprep.subr.bf16.mxu0 %v967_v9  ;;  %692 = vmatpush1.bf16.msra.mxu1 %v966_v8  ;;  %v988_v22 = vld [vmem:[%s1475_s2 + $0x154] ss:$8 sps:$4 sm:$0xff]   ;;  %v987_v23 = vld [vmem:[%s1475_s2 + $0x50] ss:$8 sps:$4 sm:$0xff]   ;;  %v991_v24 = vld [vmem:[%s1475_s2 + $0x64] ss:$8 sps:$4 sm:$0xff]  }
   0x9   :  { %693 = vmatprep.subr.bf16.mxu1 %v970_v11  ;;  %v990_v25 = vld [vmem:[%s1475_s2 + $0x150] ss:$8 sps:$4 sm:$0xff]   ;;  %v994_v26 = vld [vmem:[%s1475_s2 + $0x164] ss:$8 sps:$4 sm:$0xff]   ;;  %v993_v27 = vld [vmem:[%s1475_s2 + $0x60] ss:$8 sps:$4 sm:$0xff]  }
   0xa   :  { %v997_v28 = vld [vmem:[%s1475_s2 + $0x74] ss:$8 sps:$4 sm:$0xff]   ;;  %v996_v29 = vld [vmem:[%s1475_s2 + $0x160] ss:$8 sps:$4 sm:$0xff]   ;;  %v999_v31 = vld [vmem:[%s1475_s2 + $0x70] ss:$8 sps:$4 sm:$0xff]  }
   0xb   :  { %653 = vmatpush1.bf16.msra.mxu0 %v969_v10  ;;  %v1000_v30 = vld [vmem:[%s1475_s2 + $0x174] ss:$8 sps:$4 sm:$0xff]   ;;  %v1003_v32 = vld [vmem:[%s1475_s2 + $0x84] ss:$8 sps:$4 sm:$0xff]   ;;  %v1002_v33 = vld [vmem:[%s1475_s2 + $0x170] ss:$8 sps:$4 sm:$0xff]  }
   0xc   :  { %654 = vmatprep.subr.bf16.mxu0 %v973_v12  ;;  %694 = vmatpush1.bf16.msra.mxu1 %v972_v13  ;;  %v1006_v34 = vld [vmem:[%s1475_s2 + $0x184] ss:$8 sps:$4 sm:$0xff]   ;;  %v1005_v35 = vld [vmem:[%s1475_s2 + $0x80] ss:$8 sps:$4 sm:$0xff]   ;;  %v1009_v36 = vld [vmem:[%s1475_s2 + $0x94] ss:$8 sps:$4 sm:$0xff]  }
   0xd   :  { %695 = vmatprep.subr.bf16.mxu1 %v976_v14  ;;  %v1008_v37 = vld [vmem:[%s1475_s2 + $0x180] ss:$8 sps:$4 sm:$0xff]   ;;  %v1012_v38 = vld [vmem:[%s1475_s2 + $0x194] ss:$8 sps:$4 sm:$0xff]   ;;  %v1011_v39 = vld [vmem:[%s1475_s2 + $0x90] ss:$8 sps:$4 sm:$0xff]  }
   0xe   :  { %v1015_v40 = vld [vmem:[%s1475_s2 + $0xa4] ss:$8 sps:$4 sm:$0xff]   ;;  %v1014_v41 = vld [vmem:[%s1475_s2 + $0x190] ss:$8 sps:$4 sm:$0xff]   ;;  %v1017_v43 = vld [vmem:[%s1475_s2 + $0xa0] ss:$8 sps:$4 sm:$0xff]  }
   0xf   :  { %655 = vmatpush1.bf16.msra.mxu0 %v975_v15  ;;  %v1018_v42 = vld [vmem:[%s1475_s2 + $0x1a4] ss:$8 sps:$4 sm:$0xff]   ;;  %v1021_v44 = vld [vmem:[%s1475_s2 + $0xb4] ss:$8 sps:$4 sm:$0xff]   ;;  %v1020_v45 = vld [vmem:[%s1475_s2 + $0x1a0] ss:$8 sps:$4 sm:$0xff]  }
  0x10   :  { %656 = vmatprep.subr.bf16.mxu0 %v979_v16  ;;  %696 = vmatpush1.bf16.msra.mxu1 %v978_v17  ;;  %v1024_v46 = vld [vmem:[%s1475_s2 + $0x1b4] ss:$8 sps:$4 sm:$0xff]   ;;  %v28_v47 = vld [vmem:[%s1476_s0] sm:$0xff]  ;;  %v1023_v48 = vld [vmem:[%s1475_s2 + $0xb0] ss:$8 sps:$4 sm:$0xff]   ;;  %v1110_v15 = vmov 1  }
  0x11   :  { %697 = vmatprep.subr.bf16.mxu1 %v982_v18  ;;  %v848_v49 = vcombine.high %v28_v47, %v28_v47  ;;  %v1027_v50 = vld [vmem:[%s1475_s2 + $0xc4] ss:$8 sps:$4 sm:$0xff]   ;;  %v1026_v52 = vld [vmem:[%s1475_s2 + $0x1b0] ss:$8 sps:$4 sm:$0xff]   ;;  %v1029_v55 = vld [vmem:[%s1475_s2 + $0xc0] ss:$8 sps:$4 sm:$0xff]   ;;  %v847_v6 = vcombine.low %v28_v47, %v28_v47 }
  0x12   :  { %v29_v51 = vld [vmem:[%s1476_s0 + $0x8] sm:$0xff]  ;;  %v1033_v56 = vld [vmem:[%s1475_s2 + $0xd4] ss:$8 sps:$4 sm:$0xff]   ;;  %v1035_v59 = vld [vmem:[%s1475_s2 + $0xd0] ss:$8 sps:$4 sm:$0xff]  }
  0x13   :  { %657 = vmatpush1.bf16.msra.mxu0 %v981_v19  ;;  %680 = vmatprep.mubr.bf16.mxu0 %v848_v49  ;;  %v850_v53 = vcombine.high %v29_v51, %v29_v51  ;;  %v1030_v54 = vld [vmem:[%s1475_s2 + $0x1c4] ss:$8 sps:$4 sm:$0xff]   ;;  %v1032_v57 = vld [vmem:[%s1475_s2 + $0x1c0] ss:$8 sps:$4 sm:$0xff]   ;;  %v1036_v58 = vld [vmem:[%s1475_s2 + $0x1d4] ss:$8 sps:$4 sm:$0xff]   ;;  %v849_v8 = vcombine.low %v29_v51, %v29_v51 }
  0x14   :  { %658 = vmatprep.subr.bf16.mxu0 %v985_v20  ;;  %698 = vmatpush1.bf16.msra.mxu1 %v984_v21  ;;  %v1039_v60 = vld [vmem:[%s1475_s2 + $0xe4] ss:$8 sps:$4 sm:$0xff]   ;;  %v1038_v61 = vld [vmem:[%s1475_s2 + $0x1d0] ss:$8 sps:$4 sm:$0xff]   ;;  %v1041_v63 = vld [vmem:[%s1475_s2 + $0xe0] ss:$8 sps:$4 sm:$0xff]  }
  0x15   :  { %699 = vmatprep.subr.bf16.mxu1 %v988_v22  ;;  %721 = vmatprep.mubr.bf16.mxu1 %v850_v53  ;;  %v1042_v62 = vld [vmem:[%s1475_s2 + $0x1e4] ss:$8 sps:$4 sm:$0xff]   ;;  %v1045_v0 = vld [vmem:[%s1475_s2 + $0xf4] ss:$8 sps:$4 sm:$0xff]   ;;  %v1044_v1 = vld [vmem:[%s1475_s2 + $0x1e0] ss:$8 sps:$4 sm:$0xff]  }
  0x16   :  { %v1048_v2 = vld [vmem:[%s1475_s2 + $0x1f4] ss:$8 sps:$4 sm:$0xff]   ;;  %v1047_v3 = vld [vmem:[%s1475_s2 + $0xf0] ss:$8 sps:$4 sm:$0xff]   ;;  %v1055_v4 = vld [vmem:[%s1475_s2 + $0x204] ss:$8 sps:$4 sm:$0xff]  }
  0x17   :  { %659 = vmatpush1.bf16.msra.mxu0 %v987_v23  ;;  %v1052_v5 = vld [vmem:[%s1475_s2 + $0x1f0] ss:$8 sps:$4 sm:$0xff]   ;;  %v1053_v7 = vld [vmem:[%s1475_s2 + $0x200] ss:$8 sps:$4 sm:$0xff]   ;;  %v1060_v9 = vld [vmem:[%s1475_s2 + $0x214] ss:$8 sps:$4 sm:$0xff]  }
  0x18   :  { %660 = vmatprep.subr.bf16.mxu0 %v991_v24  ;;  %700 = vmatpush1.bf16.msra.mxu1 %v990_v25  ;;  %v1361_v10 = vld [vmem:[%s1476_s0 + $0x10] sm:$0xff]  ;;  %v127_v12 = vld [vmem:[%s1477_s1] sm:$0xff] }
  0x19   :  { %701 = vmatprep.subr.bf16.mxu1 %v994_v26  ;;  %v852_v11 = vcombine.high %v1361_v10, %v1361_v10  ;;  %131 = vperm.xlu0 %953, %v127_v12   ;;  %v1058_v13 = vld [vmem:[%s1475_s2 + $0x210] ss:$8 sps:$4 sm:$0xff]   ;;  %v1063_v14 = vld [vmem:[%s1475_s2 + $0x224] ss:$8 sps:$4 sm:$0xff]   ;;  %v1061_v16 = vld [vmem:[%s1475_s2 + $0x220] ss:$8 sps:$4 sm:$0xff]  }
  0x1a   :  { %v1066_v17 = vld [vmem:[%s1475_s2 + $0x234] ss:$8 sps:$4 sm:$0xff]   ;;  %v1064_v18 = vld [vmem:[%s1475_s2 + $0x230] ss:$8 sps:$4 sm:$0xff]   ;;  %v1069_v19 = vld [vmem:[%s1475_s2 + $0x244] ss:$8 sps:$4 sm:$0xff]  }
  0x1b   :  { %661 = vmatpush1.bf16.msra.mxu0 %v993_v27  ;;  %v1067_v20 = vld [vmem:[%s1475_s2 + $0x240] ss:$8 sps:$4 sm:$0xff]   ;;  %v1072_v21 = vld [vmem:[%s1475_s2 + $0x254] ss:$8 sps:$4 sm:$0xff]   ;;  %v1070_v22 = vld [vmem:[%s1475_s2 + $0x250] ss:$8 sps:$4 sm:$0xff]  }
  0x1c   :  { %662 = vmatprep.subr.bf16.mxu0 %v997_v28  ;;  %702 = vmatpush1.bf16.msra.mxu1 %v996_v29  ;;  %v1075_v23 = vld [vmem:[%s1475_s2 + $0x264] ss:$8 sps:$4 sm:$0xff]   ;;  %v1073_v24 = vld [vmem:[%s1475_s2 + $0x260] ss:$8 sps:$4 sm:$0xff]   ;;  %v1078_v25 = vld [vmem:[%s1475_s2 + $0x274] ss:$8 sps:$4 sm:$0xff]  }
  0x1d   :  { %703 = vmatprep.subr.bf16.mxu1 %v1000_v30  ;;  %954 = vset.pattern.permute.xlu0 %v1110_v15  ;;  %v1076_v26 = vld [vmem:[%s1475_s2 + $0x270] ss:$8 sps:$4 sm:$0xff]   ;;  %v1081_v27 = vld [vmem:[%s1475_s2 + $0x284] ss:$8 sps:$4 sm:$0xff]   ;;  %v1079_v28 = vld [vmem:[%s1475_s2 + $0x280] ss:$8 sps:$4 sm:$0xff]  }
  0x1e   :  { %774 = vperm.xlu0 %954, %v127_v12   ;;  %v1084_v29 = vld [vmem:[%s1475_s2 + $0x294] ss:$8 sps:$4 sm:$0xff]   ;;  %v1082_v30 = vld [vmem:[%s1475_s2 + $0x290] ss:$8 sps:$4 sm:$0xff]  }
  0x1f   :  { %663 = vmatpush1.bf16.msra.mxu0 %v999_v31  ;;  %v1087_v31 = vld [vmem:[%s1475_s2 + $0x2a4] ss:$8 sps:$4 sm:$0xff]  }
  0x20   :  { %664 = vmatprep.subr.bf16.mxu0 %v1003_v32  ;;  %704 = vmatpush1.bf16.msra.mxu1 %v1002_v33  ;;  %v1085_v32 = vld [vmem:[%s1475_s2 + $0x2a0] ss:$8 sps:$4 sm:$0xff]   ;;  %v1090_v33 = vld [vmem:[%s1475_s2 + $0x2b4] ss:$8 sps:$4 sm:$0xff]  }
  0x21   :  { %705 = vmatprep.subr.bf16.mxu1 %v1006_v34  ;;  %v1088_v34 = vld [vmem:[%s1475_s2 + $0x2b0] ss:$8 sps:$4 sm:$0xff]  }
  0x23   :  { %665 = vmatpush1.bf16.msra.mxu0 %v1005_v35  ;;  %v1093_v35 = vld [vmem:[%s1475_s2 + $0x2c4] ss:$8 sps:$4 sm:$0xff]  }
  0x24   :  { %666 = vmatprep.subr.bf16.mxu0 %v1009_v36  ;;  %706 = vmatpush1.bf16.msra.mxu1 %v1008_v37  ;;  %v1091_v36 = vld [vmem:[%s1475_s2 + $0x2c0] ss:$8 sps:$4 sm:$0xff]   ;;  %v1096_v37 = vld [vmem:[%s1475_s2 + $0x2d4] ss:$8 sps:$4 sm:$0xff]  }
  0x25   :  { %707 = vmatprep.subr.bf16.mxu1 %v1012_v38  ;;  %v1094_v38 = vld [vmem:[%s1475_s2 + $0x2d0] ss:$8 sps:$4 sm:$0xff]  }
  0x27   :  { %667 = vmatpush1.bf16.msra.mxu0 %v1011_v39  ;;  %v1099_v39 = vld [vmem:[%s1475_s2 + $0x2e4] ss:$8 sps:$4 sm:$0xff]  }
  0x28   :  { %668 = vmatprep.subr.bf16.mxu0 %v1015_v40  ;;  %708 = vmatpush1.bf16.msra.mxu1 %v1014_v41  ;;  %v1097_v40 = vld [vmem:[%s1475_s2 + $0x2e0] ss:$8 sps:$4 sm:$0xff]   ;;  %v1102_v41 = vld [vmem:[%s1475_s2 + $0x2f4] ss:$8 sps:$4 sm:$0xff]  }
  0x29   :  { %709 = vmatprep.subr.bf16.mxu1 %v1018_v42  ;;  %v1100_v42 = vld [vmem:[%s1475_s2 + $0x2f0] ss:$8 sps:$4 sm:$0xff]  }
  0x2b   :  { %669 = vmatpush1.bf16.msra.mxu0 %v1017_v43  ;;  %v851_v43 = vcombine.low %v1361_v10, %v1361_v10 }
  0x2c   :  { %670 = vmatprep.subr.bf16.mxu0 %v1021_v44  ;;  %710 = vmatpush1.bf16.msra.mxu1 %v1020_v45  ;;  %v12_v44 = vstv %s1478_s6  ;;  %v135_v45 = vlaneseq }
  0x2d   :  { %711 = vmatprep.subr.bf16.mxu1 %v1024_v46  ;;  %13 = vst [vmem:[#allocation2] sm:$0x1] %v12_v44 }
  0x2e   :  { %v136_v46 = vshrl.u32 %v135_v45, 7 }
  0x2f   :  { %671 = vmatpush1.bf16.msra.mxu0 %v1023_v48  ;;  %v128_v48 = vld [vmem:[%s1479_s3] ss:$2 sm:$0x3] }
  0x30   :  { %672 = vmatprep.subr.bf16.mxu0 %v1027_v50  ;;  %712 = vmatpush1.bf16.msra.mxu1 %v1026_v52  ;;  %v137_v47 = vsub.s32 0, %v136_v46  ;;  %v141_v49 = vsub.s32 1, %v136_v46 }
  0x31   :  { %713 = vmatprep.subr.bf16.mxu1 %v1030_v54 }
  0x32   :  { %v138_v50 = vrot.slane %v128_v48, %v137_v47  ;;  %v142_v51 = vrot.slane %v128_v48, %v141_v49 }
  0x33   :  { %673 = vmatpush1.bf16.msra.mxu0 %v1029_v55 }
  0x34   :  { %674 = vmatprep.subr.bf16.mxu0 %v1033_v56  ;;  %714 = vmatpush1.bf16.msra.mxu1 %v1032_v57 }
  0x35   :  { %715 = vmatprep.subr.bf16.mxu1 %v1036_v58 }
  0x37   :  { %675 = vmatpush1.bf16.msra.mxu0 %v1035_v59 }
  0x38   :  { %676 = vmatprep.subr.bf16.mxu0 %v1039_v60  ;;  %716 = vmatpush1.bf16.msra.mxu1 %v1038_v61 }
  0x39   :  { %717 = vmatprep.subr.bf16.mxu1 %v1042_v62 }
  0x3b   :  { %677 = vmatpush1.bf16.msra.mxu0 %v1041_v63 }
  0x3c   :  { %678 = vmatprep.subr.bf16.mxu0 %v1045_v0  ;;  %718 = vmatpush1.bf16.msra.mxu1 %v1044_v1 }
  0x3d   :  { %719 = vmatprep.subr.bf16.mxu1 %v1048_v2 }
  0x3f   :  { %679 = vmatpush1.bf16.msra.mxu0 %v1047_v3  ;;  %v949_v3 = vld [vmem:[%s1479_s3 + $0x1] ss:$2 sm:$0x3] }
  0x40   :  { %730 = vmatprep.subr.bf16.mxu0 %v1055_v4  ;;  %720 = vmatpush1.bf16.msra.mxu1 %v1052_v5  ;;  %v781_v4 = vrot.slane %v949_v3, %v137_v47  ;;  %v785_v5 = vrot.slane %v949_v3, %v141_v49 }
  0x42   :  { %681 = vmatmul.mubr.bf16.vlgmr.msra.gmra.mrb[0].mxu0 %v847_v6 }
  0x43   :  { %731 = vmatpush1.bf16.msra.mxu0 %v1053_v7  ;;  %762 = vmatprep.mubr.bf16.mxu0 %v852_v11  ;;  %v792_v7 = vld [vmem:[%s1480_s4] sm:$0x3] }
  0x44   :  { %722 = vmatmul.mubr.bf16.vlgmr.msra.gmra.mrb[0].mxu1 %v849_v8  ;;  %732 = vmatprep.subr.bf16.mxu0 %v1060_v9  ;;  %v801_v15 = vrot.slane %v792_v7, %v141_v49 }
  0x47   :  { %733 = vmatpush1.bf16.msra.mxu0 %v1058_v13  ;;  %v797_v13 = vrot.slane %v792_v7, %v137_v47 }
  0x48   :  { %734 = vmatprep.subr.bf16.mxu0 %v1063_v14 }
  0x4b   :  { %735 = vmatpush1.bf16.msra.mxu0 %v1061_v16 }
  0x4c   :  { %736 = vmatprep.subr.bf16.mxu0 %v1066_v17 }
  0x4f   :  { %737 = vmatpush1.bf16.msra.mxu0 %v1064_v18 }
  0x50   :  { %738 = vmatprep.subr.bf16.mxu0 %v1069_v19  ;;  %v808_v19 = vld [vmem:[%s1481_s5] sm:$0x3] }
  0x53   :  { %739 = vmatpush1.bf16.msra.mxu0 %v1067_v20 }
  0x54   :  { %740 = vmatprep.subr.bf16.mxu0 %v1072_v21 }
  0x57   :  { %741 = vmatpush1.bf16.msra.mxu0 %v1070_v22 }
  0x58   :  { %742 = vmatprep.subr.bf16.mxu0 %v1075_v23  ;;  %v817_v23 = vrot.slane %v808_v19, %v141_v49 }
  0x5b   :  { %743 = vmatpush1.bf16.msra.mxu0 %v1073_v24 }
  0x5c   :  { %744 = vmatprep.subr.bf16.mxu0 %v1078_v25  ;;  %v813_v25 = vrot.slane %v808_v19, %v137_v47 }
  0x5f   :  { %745 = vmatpush1.bf16.msra.mxu0 %v1076_v26 }
  0x60   :  { %746 = vmatprep.subr.bf16.mxu0 %v1081_v27 }
  0x63   :  { %747 = vmatpush1.bf16.msra.mxu0 %v1079_v28 }
  0x64   :  { %748 = vmatprep.subr.bf16.mxu0 %v1084_v29 }
  0x67   :  { %749 = vmatpush1.bf16.msra.mxu0 %v1082_v30 }
  0x68   :  { %750 = vmatprep.subr.bf16.mxu0 %v1087_v31  ;;  %v950_v31 = vld [vmem:[#allocation2] ss:$0 sm:$0xff] }
  0x6b   :  { %751 = vmatpush1.bf16.msra.mxu0 %v1085_v32 }
  0x6c   :  { %752 = vmatprep.subr.bf16.mxu0 %v1090_v33 }
  0x6f   :  { %753 = vmatpush1.bf16.msra.mxu0 %v1088_v34 }
  0x70   :  { %754 = vmatprep.subr.bf16.mxu0 %v1093_v35 }
  0x73   :  { %755 = vmatpush1.bf16.msra.mxu0 %v1091_v36 }
  0x74   :  { %756 = vmatprep.subr.bf16.mxu0 %v1096_v37 }
  0x77   :  { %757 = vmatpush1.bf16.msra.mxu0 %v1094_v38 }
  0x78   :  { %758 = vmatprep.subr.bf16.mxu0 %v1099_v39 }
  0x7b   :  { %759 = vmatpush1.bf16.msra.mxu0 %v1097_v40 }
  0x7c   :  { %760 = vmatprep.subr.bf16.mxu0 %v1102_v41 }
  0x7f   :  { %761 = vmatpush1.bf16.msra.mxu0 %v1100_v42 }
  0x82   :  { %763 = vmatmul.mubr.bf16.vlgmr.msra.gmra.mrb[4].mxu0 %v851_v43 }
  0x98   :  { %v132_v52 = vpop.permute.xlu0 %131 }
  0x99   :  { %v145_v53 = vmul.f32 %v138_v50, %v132_v52  ;;  %v146_v54 = vmul.f32 %v142_v51, %v132_v52 }
  0x9d   :  { %v775_v6 = vpop.permute.xlu0 %774 }
  0x9e   :  { %v788_v8 = vmul.f32 %v781_v4, %v775_v6  ;;  %v789_v9 = vmul.f32 %v785_v5, %v775_v6 }
 0x115   :  { %v682_v55 = vpop.f32.mrb[0].mxu0 }
 0x116   :  { %v683_v56 = vadd.f32 %v682_v55, %v145_v53  ;;  %v684_v57 = vpop.f32.mrb[1].mxu0 }
 0x117   :  { %v685_v58 = vadd.f32 %v684_v57, %v146_v54  ;;  %v686_v59 = vpop.f32.mrb[2].mxu0  ;;  %v723_v60 = vpop.f32.mrb[0].mxu1 }
 0x118   :  { %v724_v61 = vadd.f32 %v723_v60, %v683_v56  ;;  %v687_v62 = vpop.f32.mrb[3].mxu0  ;;  %v725_v63 = vpop.f32.mrb[1].mxu1 }
 0x119   :  { %v726_v0 = vadd.f32 %v725_v63, %v685_v58  ;;  %v727_v1 = vpop.f32.mrb[2].mxu1 }
 0x11a   :  { %v728_v2 = vpop.f32.mrb[3].mxu1 }
 0x155   :  { %v764_v10 = vpop.f32.mrb[4].mxu0 }
 0x156   :  { %v765_v11 = vadd.f32 %v764_v10, %v724_v61  ;;  %v766_v12 = vpop.f32.mrb[5].mxu0 }
 0x157   :  { %v767_v14 = vadd.f32 %v766_v12, %v726_v0  ;;  %v768_v16 = vpop.f32.mrb[6].mxu0 }
 0x158   :  { %v790_v17 = vadd.f32 %v788_v8, %v765_v11  ;;  %v769_v18 = vpop.f32.mrb[7].mxu0 }
 0x159   :  { %v791_v20 = vadd.f32 %v789_v9, %v767_v14 }
 0x15a   :  { %v804_v21 = vadd.f32 %v797_v13, %v790_v17 }
 0x15b   :  { %v805_v22 = vadd.f32 %v801_v15, %v791_v20 }
 0x15c   :  { %v806_v24 = vmax.f32 %v804_v21, 0.0 }
 0x15d   :  { %v807_v26 = vmax.f32 %v805_v22, 0.0 }
 0x15e   :  { %v820_v28 = vmul.f32 %v813_v25, %v806_v24 }
 0x15f   :  { %v821_v27 = vmul.f32 %v817_v23, %v807_v26 }
 0x161   :  { %v823_v29 = vsel %vm822_vm0, %v821_v27, 0.0 }
 0x162   :  { %v824_v30 = vadd.f32 %v823_v29, %v820_v28 }
 0x164   :  { %825 = vadd.xlane.f32.xlu1 %v824_v30 }
 0x1f1   :  { %v826_v32 = vpop.xlane.xlu1 %825 }
 0x1f2   :  { %v834_v33 = vadd.f32 %v950_v31, %v826_v32 }
 0x1f4   :  { %v835_v34 = vsub.f32 0.0, %v834_v33 }
 0x1f6   :  { %v836_v35 = vmul.f32 1.442695, %v835_v34 }
 0x1f8   :  { %1105 = vpow2.f32 %v836_v35 }
 0x202   :  { %v1106_v36 = vpop.eup %1105 }
 0x203   :  { %v838_v37 = vadd.f32 1.0, %v1106_v36 }
 0x205   :  { %1107 = vrcp.f32 %v838_v37 }
 0x20f   :  { %v1108_v38 = vpop.eup %1107 }
 0x210   :  { %842 = vst.msk [vmem:[%s1482_s7] sm:$0xff] %vm841_vm1, %v1108_v38 }

</bundles_post_ra>
